<compile_context>
chip_gen: v5e
topology: v5e:2x2
jax: 0.10.0
libtpu: 0.0.40
codegen_flags: <defaults>
</compile_context>

<pallas_src>
import functools

import jax
import jax.numpy as jnp
from jax import lax
from jax.experimental import pallas as pl
from jax.experimental.pallas import tpu as pltpu

OBS_DIM = 22
ACT_DIM = 4
IN_DIM = 2 * OBS_DIM + ACT_DIM   # 48
HIDDEN = 64                      # args.hiddenSize
OUT_DIM = 1


def _xavier_uniform(key, fan_in, fan_out, dtype=jnp.float32):
    # Matches nn.init.xavier_uniform_ (gain=1): U(-a, a), a = sqrt(6/(fan_in+fan_out)).
    # PyTorch (out_features, in_features) layout; the kernel uses it directly.
    a = (6.0 / (fan_in + fan_out)) ** 0.5
    return jax.random.uniform(key, (fan_out, fan_in), dtype=dtype, minval=-a, maxval=a)


def init_params(key):
    k1, k2, k3 = jax.random.split(key, 3)
    return {
        # Weights pre-cast to bf16 once (kernel MXU dtype); biases stay f32.
        "w1": _xavier_uniform(k1, IN_DIM, HIDDEN).astype(jnp.bfloat16),   # (64, 48)
        "b1": jnp.full((HIDDEN, 1), 0.1, jnp.float32),
        "w2": _xavier_uniform(k2, HIDDEN, HIDDEN).astype(jnp.bfloat16),   # (64, 64)
        "b2": jnp.full((HIDDEN, 1), 0.1, jnp.float32),
        "w3": _xavier_uniform(k3, HIDDEN, OUT_DIM).astype(jnp.bfloat16),  # (1, 64)
        "b3": jnp.full((1, 1), 0.1, jnp.float32),
    }


def rrd_mlp_kernel(x_ref, w1_ref, b1_ref, w2_ref, b2_ref, w3_ref, b3_ref, o_ref):
    # x arrives batch-major (TB, IN_DIM) f32 (no wrapper transpose/cast pass).
    xb = x_ref[...].astype(jnp.bfloat16)                       # (TB, IN_DIM) bf16
    # Contract the feature axis of both operands -> feature-major (HIDDEN, TB).
    h1 = lax.dot_general(w1_ref[...], xb, (((1,), (1,)), ((), ())),
                         preferred_element_type=jnp.float32)
    # f32 accumulate -> fused bias + ReLU + single bf16 materialization.
    h1 = jnp.maximum(h1 + b1_ref[...], 0.0).astype(jnp.bfloat16)
    h2 = jnp.dot(w2_ref[...], h1, preferred_element_type=jnp.float32)
    h2 = jnp.maximum(h2 + b2_ref[...], 0.0).astype(jnp.bfloat16)
    out = jnp.dot(w3_ref[...], h2, preferred_element_type=jnp.float32)   # (1, TB)
    o_ref[...] = (out + b3_ref[...]).astype(o_ref.dtype)       # lane-dense store


def _round_up(n, m):
    return ((n + m - 1) // m) * m


def _default_tb():
    # Per-generation tile: v6e has 128 MiB VMEM -> bigger tiles; v5e (16 MiB
    # scoped default) and v7x (64 MiB, 2 TCs -> prefer >=2 grid steps) use 8192.
    try:
        kind = jax.devices()[0].device_kind.lower()
    except Exception:
        return 8192
    return 16384 if "v6" in kind else 8192


def _choose_tile(batch, tb):
    """Return (tile, n_tiles) with tile satisfying the (8,128) layout rules."""
    if batch > tb:
        return tb, pl.cdiv(batch, tb)           # tb is a multiple of 128
    if batch >= 4096:
        # Keep >=2 grid steps so v7x can shard the parallel axis across both
        # TensorCores; tile stays 128-aligned so the out block is lane-legal.
        t = _round_up(pl.cdiv(batch, 2), 128)
        return t, 2
    # Single tile: block == full (padded) array, so any multiple of 8 is legal.
    return _round_up(max(batch, 8), 8), 1


@functools.partial(jax.jit, static_argnames=("tb",))
def rrd_forward(x, params, *, tb=None):
    """x: (B, IN_DIM) f32 -> (B, 1) f32 (matches RRDModel.forward)."""
    B = x.shape[0]
    if tb is None:
        tb = _default_tb()
    tb_eff, n_tiles = _choose_tile(B, tb)
    b_pad = n_tiles * tb_eff
    if b_pad != B:
        # Zero-pad the batch so every block is in-bounds; padded rows only
        # produce garbage in their own output columns and are sliced off below.
        x = jnp.pad(x, ((0, b_pad - B), (0, 0)))

    w_elems = IN_DIM * HIDDEN + HIDDEN * HIDDEN + HIDDEN * OUT_DIM
    cost = pl.CostEstimate(
        flops=2 * b_pad * w_elems,
        transcendentals=0,
        bytes_accessed=b_pad * IN_DIM * 4 + b_pad * OUT_DIM * 4
                       + 2 * w_elems + 4 * (2 * HIDDEN + OUT_DIM),
    )

    const = lambda shape: pl.BlockSpec(shape, lambda i: (0, 0))
    out_T = pl.pallas_call(
        rrd_mlp_kernel,
        out_shape=jax.ShapeDtypeStruct((OUT_DIM, b_pad), jnp.float32),
        grid=(n_tiles,),
        in_specs=[
            pl.BlockSpec((tb_eff, IN_DIM), lambda i: (i, 0)),   # x tile (streams)
            const((HIDDEN, IN_DIM)),                            # w1 (resident)
            const((HIDDEN, 1)),                                 # b1
            const((HIDDEN, HIDDEN)),                            # w2
            const((HIDDEN, 1)),                                 # b2
            const((OUT_DIM, HIDDEN)),                           # w3
            const((1, 1)),                                      # b3
        ],
        out_specs=pl.BlockSpec((OUT_DIM, tb_eff), lambda i: (0, i)),
        compiler_params=pltpu.CompilerParams(
            dimension_semantics=("parallel",),        # both TCs on v7x
            vmem_limit_bytes=32 * 1024 * 1024),       # safe on v5e/v6e/v7x
        cost_estimate=cost,
    )(
        x,
        params["w1"], params["b1"],
        params["w2"], params["b2"],
        params["w3"], params["b3"],
    )
    # Drop padded columns, back to batch-major (B, 1).
    return out_T[:, :B].T


def rrd_forward_ref(x, p):
    # Pure-JAX reference with the same bf16-matmul / f32-accumulate numerics.
    xb = x.astype(jnp.bfloat16)
    h1 = jnp.maximum(
        lax.dot_general(xb, p["w1"], (((1,), (1,)), ((), ())),
                        preferred_element_type=jnp.float32) + p["b1"].T, 0.0)
    h2 = jnp.maximum(
        jnp.dot(h1.astype(jnp.bfloat16), p["w2"].T,
                preferred_element_type=jnp.float32) + p["b2"].T, 0.0)
    return jnp.dot(h2.astype(jnp.bfloat16), p["w3"].T,
                   preferred_element_type=jnp.float32) + p["b3"].T


if __name__ == "__main__":
    key = jax.random.PRNGKey(0)
    k_param, k_x = jax.random.split(key)
    params = init_params(k_param)

    # Small example batch just for correctness; the kernel pays off for B in
    # the thousands (tile 8192/16384 rows per grid step).
    B = 8
    x = jax.random.normal(k_x, (B, IN_DIM), dtype=jnp.float32)

    out = jax.block_until_ready(rrd_forward(x, params))
    ref = jax.block_until_ready(rrd_forward_ref(x, params))

    assert out.shape == (B, OUT_DIM)
    assert jnp.allclose(out, ref, atol=1e-2, rtol=1e-2), "mismatch vs reference"

    print("KERNEL_OK")
</pallas_src>

<mosaic_0001>
module attributes {stable_mosaic.version = 11 : i64} {
  func.func @rrd_mlp_kernel(%arg0: i32, %arg1: memref<8x48xf32, #tpu.memory_space<vmem>>, %arg2: memref<64x48xbf16, #tpu.memory_space<vmem>>, %arg3: memref<64x1xf32, #tpu.memory_space<vmem>>, %arg4: memref<64x64xbf16, #tpu.memory_space<vmem>>, %arg5: memref<64x1xf32, #tpu.memory_space<vmem>>, %arg6: memref<1x64xbf16, #tpu.memory_space<vmem>>, %arg7: memref<1x1xf32, #tpu.memory_space<vmem>>, %arg8: memref<1x8xf32, #tpu.memory_space<vmem>>) attributes {dimension_semantics = [#tpu.dimension_semantics<parallel>], iteration_bounds = array<i64: 1>, scalar_prefetch = 0 : i64, scratch_operands = 0 : i64, tpu.core_type = #tpu.core_type<tc>, window_params = [{transform_indices = @transform_0, window_bounds = array<i64: 8, 48>}, {pipeline_mode = #tpu.pipeline_mode<synchronous>, transform_indices = @transform_1, window_bounds = array<i64: 64, 48>}, {pipeline_mode = #tpu.pipeline_mode<synchronous>, transform_indices = @transform_2, window_bounds = array<i64: 64, 1>}, {pipeline_mode = #tpu.pipeline_mode<synchronous>, transform_indices = @transform_3, window_bounds = array<i64: 64, 64>}, {pipeline_mode = #tpu.pipeline_mode<synchronous>, transform_indices = @transform_4, window_bounds = array<i64: 64, 1>}, {pipeline_mode = #tpu.pipeline_mode<synchronous>, transform_indices = @transform_5, window_bounds = array<i64: 1, 64>}, {pipeline_mode = #tpu.pipeline_mode<synchronous>, transform_indices = @transform_6, window_bounds = array<i64: 1, 1>}, {transform_indices = @transform_7, window_bounds = array<i64: 1, 8>}]} {
    %c0 = arith.constant 0 : index
    %c0_0 = arith.constant 0 : index
    %0 = vector.load %arg1[%c0, %c0_0] : memref<8x48xf32, #tpu.memory_space<vmem>>, vector<8x48xf32>
    %1 = arith.truncf %0 : vector<8x48xf32> to vector<8x48xbf16>
    %c0_1 = arith.constant 0 : index
    %c0_2 = arith.constant 0 : index
    %2 = vector.load %arg2[%c0_1, %c0_2] : memref<64x48xbf16, #tpu.memory_space<vmem>>, vector<64x48xbf16>
    %cst = arith.constant dense<0.000000e+00> : vector<64x8xf32>
    %3 = tpu.matmul %2, %1, %cst {dimension_numbers = #tpu.dot_dimension_numbers<[1], [1], [0], [0], [0, 0, 1, 0], [], []>} : vector<64x48xbf16>, vector<8x48xbf16>, vector<64x8xf32> -> vector<64x8xf32>
    %c0_3 = arith.constant 0 : index
    %c0_4 = arith.constant 0 : index
    %4 = vector.load %arg3[%c0_3, %c0_4] : memref<64x1xf32, #tpu.memory_space<vmem>>, vector<64x1xf32>
    %5 = vector.broadcast %4 : vector<64x1xf32> to vector<64x8xf32>
    %6 = arith.addf %3, %5 : vector<64x8xf32>
    %cst_5 = arith.constant 0.000000e+00 : f32
    %7 = vector.broadcast %cst_5 : f32 to vector<64x8xf32>
    %8 = arith.maximumf %6, %7 : vector<64x8xf32>
    %9 = arith.truncf %8 : vector<64x8xf32> to vector<64x8xbf16>
    %c0_6 = arith.constant 0 : index
    %c0_7 = arith.constant 0 : index
    %10 = vector.load %arg4[%c0_6, %c0_7] : memref<64x64xbf16, #tpu.memory_space<vmem>>, vector<64x64xbf16>
    %cst_8 = arith.constant dense<0.000000e+00> : vector<64x8xf32>
    %11 = tpu.matmul %10, %9, %cst_8 {dimension_numbers = #tpu.dot_dimension_numbers<[1], [0], [0], [1], [0, 0, 1, 1], [], []>} : vector<64x64xbf16>, vector<64x8xbf16>, vector<64x8xf32> -> vector<64x8xf32>
    %c0_9 = arith.constant 0 : index
    %c0_10 = arith.constant 0 : index
    %12 = vector.load %arg5[%c0_9, %c0_10] : memref<64x1xf32, #tpu.memory_space<vmem>>, vector<64x1xf32>
    %13 = vector.broadcast %12 : vector<64x1xf32> to vector<64x8xf32>
    %14 = arith.addf %11, %13 : vector<64x8xf32>
    %cst_11 = arith.constant 0.000000e+00 : f32
    %15 = vector.broadcast %cst_11 : f32 to vector<64x8xf32>
    %16 = arith.maximumf %14, %15 : vector<64x8xf32>
    %17 = arith.truncf %16 : vector<64x8xf32> to vector<64x8xbf16>
    %c0_12 = arith.constant 0 : index
    %c0_13 = arith.constant 0 : index
    %18 = vector.load %arg6[%c0_12, %c0_13] : memref<1x64xbf16, #tpu.memory_space<vmem>>, vector<1x64xbf16>
    %cst_14 = arith.constant dense<0.000000e+00> : vector<1x8xf32>
    %19 = tpu.matmul %18, %17, %cst_14 {dimension_numbers = #tpu.dot_dimension_numbers<[1], [0], [0], [1], [0, 0, 1, 1], [], []>} : vector<1x64xbf16>, vector<64x8xbf16>, vector<1x8xf32> -> vector<1x8xf32>
    %c0_15 = arith.constant 0 : index
    %c0_16 = arith.constant 0 : index
    %20 = vector.load %arg7[%c0_15, %c0_16] : memref<1x1xf32, #tpu.memory_space<vmem>>, vector<1x1xf32>
    %21 = vector.broadcast %20 : vector<1x1xf32> to vector<1x8xf32>
    %22 = arith.addf %19, %21 : vector<1x8xf32>
    %c0_17 = arith.constant 0 : index
    %c0_18 = arith.constant 0 : index
    %23 = vector.load %arg8[%c0_17, %c0_18] : memref<1x8xf32, #tpu.memory_space<vmem>>, vector<1x8xf32>
    tpu.vector_store %arg8[%c0_17, %c0_18], %22 {strides = array<i32>} : memref<1x8xf32, #tpu.memory_space<vmem>>, vector<1x8xf32>,
    return
  }
  func.func @transform_0(%arg0: i32) -> (i32, i32) {
    %c0_i32 = arith.constant 0 : i32
    %c0_i32_0 = arith.constant 0 : i32
    return %arg0, %c0_i32 : i32, i32
  }
  func.func @transform_1(%arg0: i32) -> (i32, i32) {
    %c0_i32 = arith.constant 0 : i32
    %c0_i32_0 = arith.constant 0 : i32
    %c0_i32_1 = arith.constant 0 : i32
    return %c0_i32, %c0_i32_0 : i32, i32
  }
  func.func @transform_2(%arg0: i32) -> (i32, i32) {
    %c0_i32 = arith.constant 0 : i32
    %c0_i32_0 = arith.constant 0 : i32
    %c0_i32_1 = arith.constant 0 : i32
    return %c0_i32, %c0_i32_0 : i32, i32
  }
  func.func @transform_3(%arg0: i32) -> (i32, i32) {
    %c0_i32 = arith.constant 0 : i32
    %c0_i32_0 = arith.constant 0 : i32
    %c0_i32_1 = arith.constant 0 : i32
    return %c0_i32, %c0_i32_0 : i32, i32
  }
  func.func @transform_4(%arg0: i32) -> (i32, i32) {
    %c0_i32 = arith.constant 0 : i32
    %c0_i32_0 = arith.constant 0 : i32
    %c0_i32_1 = arith.constant 0 : i32
    return %c0_i32, %c0_i32_0 : i32, i32
  }
  func.func @transform_5(%arg0: i32) -> (i32, i32) {
    %c0_i32 = arith.constant 0 : i32
    %c0_i32_0 = arith.constant 0 : i32
    %c0_i32_1 = arith.constant 0 : i32
    return %c0_i32, %c0_i32_0 : i32, i32
  }
  func.func @transform_6(%arg0: i32) -> (i32, i32) {
    %c0_i32 = arith.constant 0 : i32
    %c0_i32_0 = arith.constant 0 : i32
    %c0_i32_1 = arith.constant 0 : i32
    return %c0_i32, %c0_i32_0 : i32, i32
  }
  func.func @transform_7(%arg0: i32) -> (i32, i32) {
    %c0_i32 = arith.constant 0 : i32
    %c0_i32_0 = arith.constant 0 : i32
    return %c0_i32, %arg0 : i32, i32
  }
}

</mosaic_0001>

<bundles_post_ra>
// kernel: rrd_forward.1
= control target key start
LH: loop header
LB: loop body
LE: loop exit
PB: predicated region body
PF: predicated region fallthrough
CT: control target
= control target key end

     0   :  { %s562_s0 = inlined_call_operand.vmem [shape: f32[8,48], index: 0, kind: input, shape index: {}]   ;;  %s563_s1 = inlined_call_operand.vmem [shape: bf16[64,48], index: 1, kind: input, shape index: {}]   ;;  %s564_s2 = inlined_call_operand.vmem [shape: f32[64,1], index: 2, kind: input, shape index: {}]   ;;  %s565_s3 = inlined_call_operand.vmem [shape: bf16[64,64], index: 3, kind: input, shape index: {}]   ;;  %s566_s4 = inlined_call_operand.vmem [shape: f32[64,1], index: 4, kind: input, shape index: {}]   ;;  %s567_s5 = inlined_call_operand.vmem [shape: bf16[1,64], index: 5, kind: input, shape index: {}]   ;;  %s568_s6 = inlined_call_operand.<no memory space> [shape: f32[1,1], index: 6, kind: input, shape index: {}]   ;;  %s569_s7 = inlined_call_operand.hbm [shape: f32[1,8], index: 7, kind: output, shape index: {}]  }
   0x1   :  { %v12_v0 = vstv %s568_s6 }
   0x2   :  { %13 = vst [vmem:[#allocation2] sm:$0x1] %v12_v0 }
   0x3   :  { %v30_v1 = vld [vmem:[%s562_s0] sm:$0xff]  ;;  %vm108_vm0 = vcmask 392192   ;;  %v46_v2 = vld [vmem:[%s564_s2 + $0x30] sm:$0xff]  ;;  %v426_v4 = vmov 0  }
   0x4   :  { %v31_v3 = vpack.c.bf16 %v30_v1, %v30_v1  ;;  %397 = vset.pattern.permute.xlu0 %v426_v4  ;;  %398 = vset.pattern.permute.xlu1 %v426_v4  ;;  %v44_v5 = vld [vmem:[%s564_s2 + $0x20] sm:$0xff] }
   0x5   :  { %80 = vperm.xlu0 %397, %v46_v2   ;;  %70 = vperm.xlu1 %398, %v44_v5  }
   0x6   :  { %v122_v6 = vsel %vm108_vm0, %v31_v3, 0  ;;  %399 = vset.pattern.permute.xlu2 %v426_v4 }
   0x7   :  { %131 = vmatpush.bf16.xpose.msra.mxu0 %v122_v6  ;;  %386 = vmatpush.bf16.xpose.msra.mxu1 %v122_v6 }
   0x8   :  { %14 = vsyncpa [#allocation4], 0  ;;  %v378_v7 = vld [vmem:[%s563_s1] sm:$0xff]  ;;  %v47_v8 = vld [vmem:[%s564_s2 + $0x38] sm:$0xff]  ;;  %vm241_vm1 = vcmask 523264   ;;  %s427_s24 = smov [#allocation3]  }
   0x9   :  { %v45_v9 = vld [vmem:[%s564_s2 + $0x28] sm:$0xff]  ;;  %v381_v10 = vld [vmem:[%s563_s1 + $0x18] sm:$0xff]  ;;  %v42_v11 = vld [vmem:[%s564_s2 + $0x10] sm:$0xff]  ;;  %s326_s25 = sshll.u32 %s427_s24, 4  ;;  %s328_s28 = sshll.u32 %s569_s7, 4  ;;  %vm319_vm2 = vcmask 57344   ;;  %s327_s25 = int_to_ptr.vmem [resolvable:$true] %s326_s25  ;;  %s329_s28 = int_to_ptr.hbm [resolvable:$true] %s328_s28 }
   0xa   :  { %60 = vperm.xlu2 %399, %v42_v11   ;;  %v40_v12 = vld [vmem:[%s564_s2] sm:$0xff]  ;;  %v41_v13 = vld [vmem:[%s564_s2 + $0x8] sm:$0xff]  ;;  %v43_v14 = vld [vmem:[%s564_s2 + $0x18] sm:$0xff] }
   0xb   :  { %v379_v15 = vld [vmem:[%s563_s1 + $0x8] sm:$0xff]  ;;  %v180_v16 = vld [vmem:[%s566_s4 + $0x38] sm:$0xff]  ;;  %v177_v17 = vld [vmem:[%s566_s4 + $0x20] sm:$0xff] }
   0xc   :  { %v179_v18 = vld [vmem:[%s566_s4 + $0x30] sm:$0xff]  ;;  %v176_v20 = vld [vmem:[%s566_s4 + $0x18] sm:$0xff]  ;;  %v178_v21 = vld [vmem:[%s566_s4 + $0x28] sm:$0xff] }
   0xd   :  { %85 = vperm.xlu0 %397, %v47_v8   ;;  %75 = vperm.xlu1 %398, %v45_v9   ;;  %v175_v19 = vld [vmem:[%s566_s4 + $0x10] sm:$0xff]  ;;  %v174_v23 = vld [vmem:[%s566_s4 + $0x8] sm:$0xff]  ;;  %v296_v24 = vld [vmem:[#allocation2] sm:$0x1] }
   0xe   :  { %353 = vmatmul.msk.bf16.vlgmr.msra.gmra.mxu0 %vm108_vm0, %v378_v7  ;;  %356 = vmatmul.msk.bf16.vlgmr.msra.gmra.mxu1 %vm108_vm0, %v381_v10  ;;  %v380_v22 = vld [vmem:[%s563_s1 + $0x10] sm:$0xff]  ;;  %v173_v25 = vld [vmem:[%s566_s4] sm:$0xff]  ;;  %v383_v63 = vld [vmem:[%s565_s3 + $0x8] sm:$0xff] }
   0xf   :  { %v382_v62 = vld [vmem:[%s565_s3] sm:$0xff]  ;;  %v384_v0 = vld [vmem:[%s565_s3 + $0x10] sm:$0xff]  ;;  %v385_v1 = vld [vmem:[%s565_s3 + $0x18] sm:$0xff] }
  0x12   :  { %65 = vperm.xlu2 %399, %v43_v14  }
  0x15   :  { %50 = vperm.xlu0 %397, %v40_v12   ;;  %55 = vperm.xlu1 %398, %v41_v13  }
  0x1a   :  { %213 = vperm.xlu2 %399, %v179_v18  }
  0x1d   :  { %218 = vperm.xlu0 %397, %v180_v16   ;;  %203 = vperm.xlu1 %398, %v177_v17  }
  0x1e   :  { %354 = vmatmul.msk.bf16.gmra.mxu0 %vm108_vm0, %v379_v15 }
  0x22   :  { %208 = vperm.xlu2 %399, %v178_v21  }
  0x25   :  { %193 = vperm.xlu0 %397, %v175_v19   ;;  %198 = vperm.xlu1 %398, %v176_v20  }
  0x2a   :  { %183 = vperm.xlu2 %399, %v173_v25  }
  0x2d   :  { %188 = vperm.xlu0 %397, %v174_v23   ;;  %299 = vperm.xlu1 %398, %v296_v24  }
  0x2e   :  { %355 = vmatmul.msk.bf16.gmra.mxu0 %vm108_vm0, %v380_v22 }
  0x64   :  { %v61_v40 = vpop.permute.xlu2 %60 }
  0x6c   :  { %v66_v44 = vpop.permute.xlu2 %65 }
  0x74   :  { %v214_v5 = vpop.permute.xlu2 %213 }
  0x77   :  { %v81_v26 = vpop.permute.xlu0 %80  ;;  %v71_v38 = vpop.permute.xlu1 %70 }
  0x7c   :  { %v209_v12 = vpop.permute.xlu2 %208 }
  0x7f   :  { %v86_v30 = vpop.permute.xlu0 %85  ;;  %v76_v41 = vpop.permute.xlu1 %75 }
  0x87   :  { %v56_v48 = vpop.permute.xlu1 %55  ;;  %v51_v52 = vpop.permute.xlu0 %50 }
  0x8b   :  { %v133_v27 = vpop.f32.mrf.mxu0  ;;  %v148_v28 = vpop.f32.mrf.mxu1 }
  0x8c   :  { %v149_v29 = vadd.f32 %v148_v28, %v81_v26  ;;  %v134_v56 = vadd.f32 %v133_v27, %v51_v52 }
  0x8e   :  { %v159_v33 = vmax.f32 %v149_v29, 0.0  ;;  %v153_v60 = vmax.f32 %v134_v56, 0.0 }
  0x8f   :  { %v219_v4 = vpop.permute.xlu0 %218  ;;  %v204_v8 = vpop.permute.xlu1 %203 }
  0x93   :  { %v135_v31 = vpop.f32.mrf.mxu0  ;;  %v150_v32 = vpop.f32.mrf.mxu1 }
  0x94   :  { %v151_v34 = vadd.f32 %v150_v32, %v86_v30  ;;  %v136_v53 = vadd.f32 %v135_v31, %v56_v48  ;;  %v184_v31 = vpop.permute.xlu2 %183 }
  0x96   :  { %v160_v35 = vmax.f32 %v151_v34, 0.0  ;;  %v154_v58 = vmax.f32 %v136_v53, 0.0 }
  0x97   :  { %v194_v10 = vpop.permute.xlu0 %193  ;;  %v199_v20 = vpop.permute.xlu1 %198 }
  0x98   :  { %v164_v36 = vpack.c.bf16 %v160_v35, %v159_v33  ;;  %v161_v61 = vpack.c.bf16 %v154_v58, %v153_v60 }
  0x9a   :  { %258 = vmatpush.bf16.msrb.mxu1 %v164_v36  ;;  %387 = vmatpush.bf16.msra.mxu2 %v164_v36 }
  0x9b   :  { %v138_v37 = vpop.f32.mrf.mxu0  ;;  %388 = vmatpush.bf16.msra.mxu3 %v164_v36 }
  0x9c   :  { %v139_v49 = vadd.f32 %v138_v37, %v61_v40 }
  0x9e   :  { %v155_v57 = vmax.f32 %v139_v49, 0.0 }
  0x9f   :  { %v189_v27 = vpop.permute.xlu0 %188 }
  0xa3   :  { %v140_v39 = vpop.f32.mrf.mxu0 }
  0xa4   :  { %v141_v46 = vadd.f32 %v140_v39, %v66_v44  ;;  %v300_v39 = vpop.permute.xlu1 %299 }
  0xa5   :  { %v302_v40 = vperm.slane %v300_v39, 0 }
  0xa6   :  { %v156_v54 = vmax.f32 %v141_v46, 0.0 }
  0xa8   :  { %v162_v59 = vpack.c.bf16 %v156_v54, %v155_v57 }
  0xab   :  { %v143_v42 = vpop.f32.mrf.mxu0 }
  0xac   :  { %v144_v43 = vadd.f32 %v143_v42, %v71_v38  ;;  %v295_v38 = vld [vmem:[%s567_s5] sm:$0x1] }
  0xae   :  { %v157_v50 = vmax.f32 %v144_v43, 0.0 }
  0xb3   :  { %v145_v45 = vpop.f32.mrf.mxu0 }
  0xb4   :  { %v146_v47 = vadd.f32 %v145_v45, %v76_v41 }
  0xb6   :  { %v158_v51 = vmax.f32 %v146_v47, 0.0 }
  0xb8   :  { %v163_v55 = vpack.c.bf16 %v158_v51, %v157_v50 }
  0xba   :  { %259 = vmatpush.bf16.msrb.mxu1 %v163_v55  ;;  %389 = vmatpush.bf16.msra.mxu2 %v163_v55 }
  0xbb   :  { %390 = vmatpush.bf16.msra.mxu3 %v163_v55 }
  0xbe   :  { %260 = vmatpush.bf16.msrb.mxu1 %v162_v59  ;;  %391 = vmatpush.bf16.msra.mxu2 %v162_v59 }
  0xbf   :  { %392 = vmatpush.bf16.msra.mxu3 %v162_v59 }
  0xc2   :  { %261 = vmatpush.bf16.msrb.mxu1 %v161_v61  ;;  %393 = vmatpush.bf16.msra.mxu2 %v161_v61 }
  0xc3   :  { %394 = vmatpush.bf16.msra.mxu3 %v161_v61 }
  0xc5   :  { %373 = vmatmul.msk.bf16.vlgmr.msrb.gmra.mxu1 %vm241_vm1, %v382_v62  ;;  %374 = vmatmul.msk.bf16.vlgmr.msra.gmra.mxu2 %vm241_vm1, %v383_v63 }
  0xc6   :  { %375 = vmatmul.msk.bf16.vlgmr.msra.gmra.mxu3 %vm241_vm1, %v384_v0 }
  0xd6   :  { %376 = vmatmul.msk.bf16.gmra.mxu3 %vm241_vm1, %v385_v1 }
 0x142   :  { %v263_v9 = vpop.f32.mrf.mxu1 }
 0x143   :  { %v264_v32 = vadd.f32 %v263_v9, %v184_v31 }
 0x145   :  { %v283_v36 = vmax.f32 %v264_v32, 0.0 }
 0x148   :  { %v268_v6 = vpop.f32.mrf.mxu2 }
 0x149   :  { %v273_v2 = vpop.f32.mrf.mxu3  ;;  %v269_v25 = vadd.f32 %v268_v6, %v194_v10 }
 0x14a   :  { %v274_v17 = vadd.f32 %v273_v2, %v204_v8  ;;  %v265_v24 = vpop.f32.mrf.mxu1 }
 0x14b   :  { %v266_v28 = vadd.f32 %v265_v24, %v189_v27  ;;  %v285_v33 = vmax.f32 %v269_v25, 0.0 }
 0x14c   :  { %v287_v26 = vmax.f32 %v274_v17, 0.0 }
 0x14d   :  { %v284_v34 = vmax.f32 %v266_v28, 0.0 }
 0x14f   :  { %v291_v37 = vpack.c.bf16 %v284_v34, %v283_v36 }
 0x150   :  { %v270_v16 = vpop.f32.mrf.mxu2 }
 0x151   :  { %v275_v3 = vpop.f32.mrf.mxu3  ;;  %v271_v21 = vadd.f32 %v270_v16, %v199_v20 }
 0x152   :  { %v276_v14 = vadd.f32 %v275_v3, %v209_v12 }
 0x153   :  { %v286_v29 = vmax.f32 %v271_v21, 0.0 }
 0x154   :  { %v288_v22 = vmax.f32 %v276_v14, 0.0 }
 0x155   :  { %v292_v35 = vpack.c.bf16 %v286_v29, %v285_v33 }
 0x156   :  { %v293_v30 = vpack.c.bf16 %v288_v22, %v287_v26 }
 0x159   :  { %v278_v7 = vpop.f32.mrf.mxu3 }
 0x15a   :  { %v279_v11 = vadd.f32 %v278_v7, %v214_v5 }
 0x15c   :  { %v289_v18 = vmax.f32 %v279_v11, 0.0 }
 0x161   :  { %v280_v13 = vpop.f32.mrf.mxu3 }
 0x162   :  { %v281_v15 = vadd.f32 %v280_v13, %v219_v4 }
 0x164   :  { %v290_v19 = vmax.f32 %v281_v15, 0.0 }
 0x166   :  { %v294_v23 = vpack.c.bf16 %v290_v19, %v289_v18 }
 0x168   :  { %310 = vmatpush.bf16.msrb.mxu2 %v294_v23 }
 0x16c   :  { %311 = vmatpush.bf16.msrb.mxu2 %v293_v30 }
 0x170   :  { %312 = vmatpush.bf16.msrb.mxu2 %v292_v35 }
 0x174   :  { %313 = vmatpush.bf16.msrb.mxu2 %v291_v37 }
 0x177   :  { %377 = vmatmul.msk.bf16.vlgmr.msrb.gmra.mxu2 %vm241_vm1, %v295_v38 }
 0x1fa   :  { %v315_v41 = vpop.f32.mrf.mxu2 }
 0x1fb   :  { %v316_v42 = vadd.f32 %v315_v41, %v302_v40 }
 0x1fd   :  { %320 = vst.msk [vmem:[#allocation3] sm:$0x1] %vm319_vm2, %v316_v42 }
 0x1fe   :  { %331 = dma.vmem_to_hbm [thread:$0]  %s327_s25, 16, %s329_s28, [#allocation4]  }
 0x202   :  { %v317_v43 = vpop.f32.mrf.mxu2 }
 0x203   :  { %424 = dma.done.wait [#allocation4], 16  }
 0x204   :  { %425 = vsyncadd [#allocation4], 4294967280 }
 0x205   :  { %336 = vsyncpa [#allocation4], 1 }

</bundles_post_ra>
